<compile_context>
chip_gen: v5e
topology: v5e:2x2
jax: 0.10.0
libtpu: 0.0.40
codegen_flags: <defaults>
</compile_context>

<pallas_src>
import functools

import jax
import jax.numpy as jnp
from jax.experimental import pallas as pl
from jax.experimental.pallas import tpu as pltpu


# ---------------- config (MLPConfig equivalent, set deterministically) -------
NUM_INPUT_DIM = 16
NUM_HIDDEN_DIM = 32
NUM_OUTPUT_DIM = 8
NUM_HIDDEN_LAYERS = 3            # ModuleList length; forward uses first 2 only
HIDDEN_ACTIVATION = "leakyrelu"  # LeakyReLU(negative_slope=0.01)
OUTPUT_ACTIVATION = "tanh"
BATCH = 8

LEAKY_SLOPE = 0.01               # torch.nn.LeakyReLU default

# Lane-dense padded widths (everything 128 wide -> unmasked layouts everywhere).
HP = 128                         # padded hidden width
OUT_PAD = 128                    # padded output width
D_IN = NUM_INPUT_DIM
N_REM = NUM_HIDDEN_LAYERS - 2    # used hidden layers beyond the fused first one


def _round_up(a, m):
    return (a + m - 1) // m * m


# ---------------- packed weight-slab layout (static row offsets) -------------
# All sections are 8-row aligned so static in-kernel slices are tile-aligned.
_B_ROWS = 8                           # bias sections padded to 8 rows
R_W01 = 0                             # fused (linear_in o layers[0]) weight: D_IN x 128
R_B01 = _round_up(R_W01 + D_IN, 8)    # fused bias (row R_B01 only)
R_WH = R_B01 + _B_ROWS                # remaining hidden layers: N_REM blocks of (128 W + 8 bias)
HID_BLOCK = HP + _B_ROWS
R_WOUT = R_WH + N_REM * HID_BLOCK     # output weight: 128 x 128
R_BOUT = R_WOUT + HP                  # output bias (row R_BOUT only)
SLAB_ROWS = R_BOUT + _B_ROWS          # total slab rows (~296 x 128 f32 ~ 148 KB)


def _leaky_relu(x):
    return jnp.where(x >= 0, x, LEAKY_SLOPE * x)


# ------------------------------- kernel --------------------------------------
def mlp_kernel(x_ref, slab_ref, o_ref):
    """x tile [tile_b, D_IN] @ packed lane-dense weight slab -> [tile_b, 128]."""
    x = x_ref[...]

    # Fused (linear_in o layers[0]) + LeakyReLU.  Static slab slices are free.
    w01 = slab_ref[R_W01:R_W01 + D_IN, :]                  # [D_IN, 128]
    b01 = slab_ref[R_B01:R_B01 + 1, :]                     # [1, 128]
    out = _leaky_relu(
        jnp.dot(x, w01, preferred_element_type=jnp.float32) + b01)

    # Remaining (used) hidden layers — static unroll at trace time.
    for j in range(N_REM):
        base = R_WH + j * HID_BLOCK
        w = slab_ref[base:base + HP, :]                    # [128, 128]
        b = slab_ref[base + HP:base + HP + 1, :]           # [1, 128]
        out = _leaky_relu(
            jnp.dot(out, w, preferred_element_type=jnp.float32) + b)

    # Output layer + tanh, unmasked lane-dense store.
    w_out = slab_ref[R_WOUT:R_WOUT + HP, :]                # [128, 128]
    b_out = slab_ref[R_BOUT:R_BOUT + 1, :]                 # [1, 128]
    y = jnp.dot(out, w_out, preferred_element_type=jnp.float32) + b_out
    o_ref[...] = jnp.tanh(y).astype(o_ref.dtype)


# ------------------------------ weight packing --------------------------------
def prepare_kernel_params(params):
    """One-time param prep: fuse linear_in+layers[0], pre-transpose to [in,out],
    zero-pad to 128 lanes, and pack everything into a single slab.

    Call this ONCE per set of weights and reuse the returned slab; it is the
    expensive-relative-to-the-kernel part and must not run per forward call.

    Note: the linear_in/layers[0] fusion re-associates the accumulation order,
    so results match PyTorch to ~1e-4 rather than bit-exactly.
    """
    w_in, b_in, w_hid, b_hid, w_out, b_out = params
    assert NUM_HIDDEN_LAYERS >= 2, "fusion path assumes >=1 used hidden layer"

    H = NUM_HIDDEN_DIM
    slab = jnp.zeros((SLAB_ROWS, HP), jnp.float32)

    # x @ W_in.T @ W_h0.T + (b_in @ W_h0.T + b_h0)  ->  x @ W01 + b01
    w01 = w_in.T @ w_hid[0].T                              # [D_IN, H]
    b01 = b_in @ w_hid[0].T + b_hid[0]                     # [1, H]
    slab = slab.at[R_W01:R_W01 + D_IN, :H].set(w01)
    slab = slab.at[R_B01, :H].set(b01[0])

    # Remaining used hidden layers (pre-transposed to [in, out], zero-padded).
    for j in range(N_REM):
        base = R_WH + j * HID_BLOCK
        slab = slab.at[base:base + H, :H].set(w_hid[1 + j].T)
        slab = slab.at[base + HP, :H].set(b_hid[1 + j][0])

    # Output layer pre-transposed and zero-padded (rows to 128, lanes to 128).
    slab = slab.at[R_WOUT:R_WOUT + H, :NUM_OUTPUT_DIM].set(w_out.T)
    slab = slab.at[R_BOUT, :NUM_OUTPUT_DIM].set(b_out[0])
    return slab


# ------------------------------ forward wrapper --------------------------------
@functools.partial(jax.jit, static_argnames=("max_tile_rows",))
def mlp_forward(x, slab, max_tile_rows=1024):
    """Forward pass.  `slab` is the pre-packed weight slab from
    prepare_kernel_params (computed once, reused across calls)."""
    B, d_in = x.shape
    assert d_in == D_IN

    b8 = _round_up(B, 8)
    if b8 <= max_tile_rows:
        # Small/medium batch: one grid step (no reuse benefit from tiling;
        # each extra step costs ~0.35 us of pipeline overhead).
        tile_b, b_pad = b8, b8
    else:
        tile_b = max_tile_rows
        b_pad = _round_up(B, tile_b)
        n_steps = b_pad // tile_b
        if n_steps > 1 and n_steps % 2:
            # Even step count so the "parallel" batch axis splits evenly
            # across v7x's two TensorCores (extra tile is garbage rows,
            # sliced away below).
            b_pad += tile_b
    if b_pad != B:
        x = jnp.pad(x, ((0, b_pad - B), (0, 0)))
    grid = (b_pad // tile_b,)

    # VMEM note: even at tile_b=1024 the double-buffered tiles total ~1.5 MiB
    # (x 64 KB + out 512 KB + resident 148 KB slab), far under the 32 MiB
    # scoped default on v5e/v6e/v7x -> no vmem_limit override needed.
    out = pl.pallas_call(
        mlp_kernel,
        out_shape=jax.ShapeDtypeStruct((b_pad, OUT_PAD), jnp.float32),
        grid_spec=pltpu.PrefetchScalarGridSpec(
            num_scalar_prefetch=0,
            grid=grid,
            in_specs=[
                pl.BlockSpec((tile_b, D_IN), lambda i: (i, 0)),      # x tile
                pl.BlockSpec((SLAB_ROWS, HP), lambda i: (0, 0)),     # weight slab (resident)
            ],
            out_specs=pl.BlockSpec((tile_b, OUT_PAD), lambda i: (i, 0)),
        ),
        compiler_params=pltpu.CompilerParams(
            dimension_semantics=("parallel",)),   # v7x: shard batch over 2 TCs
    )(x, slab)

    # Slice away batch padding + lane padding; fuses inside this jit.
    return out[:B, :NUM_OUTPUT_DIM]


# ------------------------------ init & reference -----------------------------
def init_params(key):
    """Deterministic torch.nn.Linear-like uniform fan-in init (all layers)."""
    ks = jax.random.split(key, 8)

    def lin(kw, kb, out_dim, in_dim):
        bound = 1.0 / jnp.sqrt(in_dim)
        w = jax.random.uniform(kw, (out_dim, in_dim), jnp.float32, -bound, bound)
        b = jax.random.uniform(kb, (1, out_dim), jnp.float32, -bound, bound)
        return w, b

    w_in, b_in = lin(ks[0], ks[1], NUM_HIDDEN_DIM, NUM_INPUT_DIM)
    bound = 1.0 / jnp.sqrt(NUM_HIDDEN_DIM)
    # All NUM_HIDDEN_LAYERS hidden layers exist (matching the module), even
    # though the forward pass only ever uses the first NUM_HIDDEN_LAYERS - 1.
    w_hid = jax.random.uniform(ks[2], (NUM_HIDDEN_LAYERS, NUM_HIDDEN_DIM, NUM_HIDDEN_DIM),
                               jnp.float32, -bound, bound)
    b_hid = jax.random.uniform(ks[3], (NUM_HIDDEN_LAYERS, 1, NUM_HIDDEN_DIM),
                               jnp.float32, -bound, bound)
    w_out, b_out = lin(ks[4], ks[5], NUM_OUTPUT_DIM, NUM_HIDDEN_DIM)
    return w_in, b_in, w_hid, b_hid, w_out, b_out


def mlp_reference(x, params):
    """Pure-JAX mirror of the exact (unfused) PyTorch forward."""
    w_in, b_in, w_hid, b_hid, w_out, b_out = params
    out = x @ w_in.T + b_in
    for i in range(NUM_HIDDEN_LAYERS - 1):
        out = _leaky_relu(out @ w_hid[i].T + b_hid[i])
    return jnp.tanh(out @ w_out.T + b_out)


# --------------------------------- main ---------------------------------------
if __name__ == "__main__":
    key = jax.random.PRNGKey(0)
    k_x, k_x2, k_x3, k_p = jax.random.split(key, 4)
    params = init_params(k_p)

    # Weight fusion / transposition / slab packing happens exactly ONCE here;
    # every forward call below reuses the same packed slab.
    slab = jax.block_until_ready(prepare_kernel_params(params))

    # 1) Primary small run (single grid step, grid=(1,)).
    x = jax.random.normal(k_x, (BATCH, NUM_INPUT_DIM), jnp.float32)
    y = jax.block_until_ready(mlp_forward(x, slab))
    y_ref = mlp_reference(x, params)
    assert y.shape == (BATCH, NUM_OUTPUT_DIM)
    # Tolerance slightly relaxed vs 1e-5: linear_in+layers[0] fusion re-associates sums.
    assert jnp.allclose(y, y_ref, atol=1e-4, rtol=1e-4)

    # 2) B=40 now also runs as a single grid step (no tiling benefit at this size).
    x2 = jax.random.normal(k_x2, (40, NUM_INPUT_DIM), jnp.float32)
    y2 = jax.block_until_ready(mlp_forward(x2, slab))
    y2_ref = mlp_reference(x2, params)
    assert y2.shape == (40, NUM_OUTPUT_DIM)
    assert jnp.allclose(y2, y2_ref, atol=1e-4, rtol=1e-4)

    # 3) Large batch exercises batch padding + multi-step tiling with an even
    #    grid (1200 rows, tile 512 -> 3 steps bumped to 4 for v7x megacore).
    x3 = jax.random.normal(k_x3, (1200, NUM_INPUT_DIM), jnp.float32)
    y3 = jax.block_until_ready(mlp_forward(x3, slab, max_tile_rows=512))
    y3_ref = mlp_reference(x3, params)
    assert y3.shape == (1200, NUM_OUTPUT_DIM)
    assert jnp.allclose(y3, y3_ref, atol=1e-4, rtol=1e-4)

    print("KERNEL_OK")
</pallas_src>

<mosaic_0001>
module attributes {stable_mosaic.version = 11 : i64} {
  func.func @mlp_kernel(%arg0: i32, %arg1: memref<8x16xf32, #tpu.memory_space<vmem>>, %arg2: memref<296x128xf32, #tpu.memory_space<vmem>>, %arg3: memref<8x128xf32, #tpu.memory_space<vmem>>) attributes {dimension_semantics = [#tpu.dimension_semantics<parallel>], iteration_bounds = array<i64: 1>, scalar_prefetch = 0 : i64, scratch_operands = 0 : i64, tpu.core_type = #tpu.core_type<tc>, window_params = [{transform_indices = @transform_0, window_bounds = array<i64: 8, 16>}, {pipeline_mode = #tpu.pipeline_mode<synchronous>, transform_indices = @transform_1, window_bounds = array<i64: 296, 128>}, {transform_indices = @transform_2, window_bounds = array<i64: 8, 128>}]} {
    %c0 = arith.constant 0 : index
    %c0_0 = arith.constant 0 : index
    %0 = vector.load %arg1[%c0, %c0_0] : memref<8x16xf32, #tpu.memory_space<vmem>>, vector<8x16xf32>
    %c0_1 = arith.constant 0 : index
    %c0_2 = arith.constant 0 : index
    %1 = vector.load %arg2[%c0_1, %c0_2] : memref<296x128xf32, #tpu.memory_space<vmem>>, vector<16x128xf32>
    %c16 = arith.constant 16 : index
    %c0_3 = arith.constant 0 : index
    %2 = vector.load %arg2[%c16, %c0_3] : memref<296x128xf32, #tpu.memory_space<vmem>>, vector<1x128xf32>
    %cst = arith.constant dense<0.000000e+00> : vector<8x128xf32>
    %3 = tpu.matmul %0, %1, %cst {dimension_numbers = #tpu.dot_dimension_numbers<[1], [0], [0], [1], [0, 0, 1, 1], [], []>} : vector<8x16xf32>, vector<16x128xf32>, vector<8x128xf32> -> vector<8x128xf32>
    %4 = vector.broadcast %2 : vector<1x128xf32> to vector<8x128xf32>
    %5 = arith.addf %3, %4 : vector<8x128xf32>
    %cst_4 = arith.constant 0.000000e+00 : f32
    %6 = vector.broadcast %cst_4 : f32 to vector<8x128xf32>
    %7 = arith.cmpf oge, %5, %6 : vector<8x128xf32>
    %cst_5 = arith.constant 0.00999999977 : f32
    %8 = vector.broadcast %cst_5 : f32 to vector<8x128xf32>
    %9 = arith.mulf %8, %5 : vector<8x128xf32>
    %10 = arith.select %7, %5, %9 : vector<8x128xi1>, vector<8x128xf32>
    %c24 = arith.constant 24 : index
    %c0_6 = arith.constant 0 : index
    %11 = vector.load %arg2[%c24, %c0_6] : memref<296x128xf32, #tpu.memory_space<vmem>>, vector<128x128xf32>
    %c152 = arith.constant 152 : index
    %c0_7 = arith.constant 0 : index
    %12 = vector.load %arg2[%c152, %c0_7] : memref<296x128xf32, #tpu.memory_space<vmem>>, vector<1x128xf32>
    %cst_8 = arith.constant dense<0.000000e+00> : vector<8x128xf32>
    %13 = tpu.matmul %10, %11, %cst_8 {dimension_numbers = #tpu.dot_dimension_numbers<[1], [0], [0], [1], [0, 0, 1, 1], [], []>} : vector<8x128xf32>, vector<128x128xf32>, vector<8x128xf32> -> vector<8x128xf32>
    %14 = vector.broadcast %12 : vector<1x128xf32> to vector<8x128xf32>
    %15 = arith.addf %13, %14 : vector<8x128xf32>
    %cst_9 = arith.constant 0.000000e+00 : f32
    %16 = vector.broadcast %cst_9 : f32 to vector<8x128xf32>
    %17 = arith.cmpf oge, %15, %16 : vector<8x128xf32>
    %cst_10 = arith.constant 0.00999999977 : f32
    %18 = vector.broadcast %cst_10 : f32 to vector<8x128xf32>
    %19 = arith.mulf %18, %15 : vector<8x128xf32>
    %20 = arith.select %17, %15, %19 : vector<8x128xi1>, vector<8x128xf32>
    %c160 = arith.constant 160 : index
    %c0_11 = arith.constant 0 : index
    %21 = vector.load %arg2[%c160, %c0_11] : memref<296x128xf32, #tpu.memory_space<vmem>>, vector<128x128xf32>
    %c288 = arith.constant 288 : index
    %c0_12 = arith.constant 0 : index
    %22 = vector.load %arg2[%c288, %c0_12] : memref<296x128xf32, #tpu.memory_space<vmem>>, vector<1x128xf32>
    %cst_13 = arith.constant dense<0.000000e+00> : vector<8x128xf32>
    %23 = tpu.matmul %20, %21, %cst_13 {dimension_numbers = #tpu.dot_dimension_numbers<[1], [0], [0], [1], [0, 0, 1, 1], [], []>} : vector<8x128xf32>, vector<128x128xf32>, vector<8x128xf32> -> vector<8x128xf32>
    %24 = vector.broadcast %22 : vector<1x128xf32> to vector<8x128xf32>
    %25 = arith.addf %23, %24 : vector<8x128xf32>
    %26 = math.tanh %25 : vector<8x128xf32>
    %c0_14 = arith.constant 0 : index
    %c0_15 = arith.constant 0 : index
    %27 = vector.load %arg3[%c0_14, %c0_15] : memref<8x128xf32, #tpu.memory_space<vmem>>, vector<8x128xf32>
    tpu.vector_store %arg3[%c0_14, %c0_15], %26 {strides = array<i32>} : memref<8x128xf32, #tpu.memory_space<vmem>>, vector<8x128xf32>,
    return
  }
  func.func @transform_0(%arg0: i32) -> (i32, i32) {
    %c0_i32 = arith.constant 0 : i32
    %c0_i32_0 = arith.constant 0 : i32
    return %arg0, %c0_i32 : i32, i32
  }
  func.func @transform_1(%arg0: i32) -> (i32, i32) {
    %c0_i32 = arith.constant 0 : i32
    %c0_i32_0 = arith.constant 0 : i32
    %c0_i32_1 = arith.constant 0 : i32
    return %c0_i32, %c0_i32_0 : i32, i32
  }
  func.func @transform_2(%arg0: i32) -> (i32, i32) {
    %c0_i32 = arith.constant 0 : i32
    %c0_i32_0 = arith.constant 0 : i32
    return %arg0, %c0_i32 : i32, i32
  }
}

</mosaic_0001>

<bundles_post_ra>
// kernel: mlp_forward.1
= control target key start
LH: loop header
LB: loop body
LE: loop exit
PB: predicated region body
PF: predicated region fallthrough
CT: control target
= control target key end

     0   :  { %7 = vsyncpa [#allocation3], 0  ;;  %s291_s0 = inlined_call_operand.hbm [shape: f32[8,16], index: 0, kind: input, shape index: {}]   ;;  %s292_s1 = inlined_call_operand.hbm [shape: f32[296,128], index: 1, kind: input, shape index: {}]   ;;  %s293_s2 = inlined_call_operand.hbm [shape: f32[8,128], index: 2, kind: output, shape index: {}]  }
   0x1   :  { %8 = vsyncpa [#allocation6], 0 }
   0x2   :  { %9 = vsyncpa [#allocation4], 0  ;;  %s15_s11 = sshll.u32 %s291_s0, 4  ;;  %s262_s12 = smov [#allocation2]   ;;  %s16_s11 = int_to_ptr.hbm [resolvable:$true] %s15_s11 }
   0x3   :  { %s17_s13 = sshll.u32 %s262_s12, 4  ;;  %s25_s16 = sshll.u32 %s292_s1, 4  ;;  %s18_s13 = int_to_ptr.vmem [resolvable:$true] %s17_s13  ;;  %s26_s16 = int_to_ptr.hbm [resolvable:$true] %s25_s16 }
   0x4   :  { %20 = dma.hbm_to_vmem [thread:$0]  %s16_s11, 128, %s18_s13, [#allocation3]  }
   0x5   :  { %s263_s17 = smov [#allocation5]   ;;  %s264_s19 = smov 128  }
   0x6   :  { %s27_s18 = sshll.u32 %s263_s17, 4  ;;  %s265_s20 = smov 8   ;;  %s28_s18 = int_to_ptr.vmem [resolvable:$true] %s27_s18 }
   0x7   :  { %33 = dma.hbm_to_vmem [thread:$0]  %s26_s16, 4736, %s28_s18, [#allocation6], %s264_s19, %s264_s19, %s265_s20  }
   0x8   :  { %256 = dma.done.wait [#allocation3], 128  }
   0x9   :  { %257 = vsyncadd [#allocation3], 4294967168 }
   0xa   :  { %258 = dma.done.wait [#allocation6], 4736  }
   0xb   :  { %259 = vsyncadd [#allocation6], 4294962560  ;;  %v44_v0 = vld [vmem:[#allocation5 + $0x8] sm:$0xff]  ;;  %v43_v1 = vld [vmem:[#allocation5] sm:$0xff]  ;;  %vm47_vm0 = vcmask 130048   ;;  %s266_s0 = smov [#allocation7]  }
   0xc   :  { %65 = vmatpush.msra.mxu0 %v44_v0  ;;  %v42_v2 = vld [vmem:[#allocation2] sm:$0xff]  ;;  %v89_v3 = vld [vmem:[#allocation5 + $0x90] sm:$0xff]  ;;  %v88_v4 = vld [vmem:[#allocation5 + $0x88] sm:$0xff]  ;;  %s160_s1 = sshll.u32 %s266_s0, 4  ;;  %s162_s23 = sshll.u32 %s293_s2, 4  ;;  %s161_s1 = int_to_ptr.vmem [resolvable:$true] %s160_s1  ;;  %s163_s23 = int_to_ptr.hbm [resolvable:$true] %s162_s23 }
   0xd   :  { %92 = vmatpush.msra.mxu1 %v89_v3  ;;  %v87_v5 = vld [vmem:[#allocation5 + $0x80] sm:$0xff]  ;;  %v86_v6 = vld [vmem:[#allocation5 + $0x78] sm:$0xff]  ;;  %v85_v7 = vld [vmem:[#allocation5 + $0x70] sm:$0xff] }
   0xe   :  { %66 = vmatpush.msra.mxu0 %v43_v1  ;;  %v84_v8 = vld [vmem:[#allocation5 + $0x68] sm:$0xff]  ;;  %v83_v9 = vld [vmem:[#allocation5 + $0x60] sm:$0xff]  ;;  %v82_v10 = vld [vmem:[#allocation5 + $0x58] sm:$0xff] }
   0xf   :  { %173 = vmatmul.msk.f32.vlgmr.msra.gmra.mxu0 %vm47_vm0, %v42_v2  ;;  %93 = vmatpush.msra.mxu1 %v88_v4  ;;  %v81_v11 = vld [vmem:[#allocation5 + $0x50] sm:$0xff]  ;;  %v80_v12 = vld [vmem:[#allocation5 + $0x48] sm:$0xff]  ;;  %v79_v13 = vld [vmem:[#allocation5 + $0x40] sm:$0xff] }
  0x10   :  { %v78_v14 = vld [vmem:[#allocation5 + $0x38] sm:$0xff]  ;;  %v77_v15 = vld [vmem:[#allocation5 + $0x30] sm:$0xff]  ;;  %v76_v16 = vld [vmem:[#allocation5 + $0x28] sm:$0xff] }
  0x11   :  { %94 = vmatpush.msra.mxu1 %v87_v5  ;;  %v75_v17 = vld [vmem:[#allocation5 + $0x20] sm:$0xff]  ;;  %v74_v18 = vld [vmem:[#allocation5 + $0x18] sm:$0xff]  ;;  %v129_v20 = vld [vmem:[#allocation5 + $0x110] sm:$0xff] }
  0x12   :  { %v130_v19 = vld [vmem:[#allocation5 + $0x118] sm:$0xff]  ;;  %v128_v21 = vld [vmem:[#allocation5 + $0x108] sm:$0xff]  ;;  %v127_v22 = vld [vmem:[#allocation5 + $0x100] sm:$0xff] }
  0x13   :  { %95 = vmatpush.msra.mxu1 %v86_v6  ;;  %133 = vmatpush.msra.mxu2 %v130_v19  ;;  %v126_v23 = vld [vmem:[#allocation5 + $0xf8] sm:$0xff]  ;;  %v125_v24 = vld [vmem:[#allocation5 + $0xf0] sm:$0xff]  ;;  %v124_v25 = vld [vmem:[#allocation5 + $0xe8] sm:$0xff] }
  0x14   :  { %v123_v26 = vld [vmem:[#allocation5 + $0xe0] sm:$0xff]  ;;  %v122_v27 = vld [vmem:[#allocation5 + $0xd8] sm:$0xff]  ;;  %v121_v28 = vld [vmem:[#allocation5 + $0xd0] sm:$0xff] }
  0x15   :  { %96 = vmatpush.msra.mxu1 %v85_v7  ;;  %134 = vmatpush.msra.mxu2 %v129_v20  ;;  %v120_v29 = vld [vmem:[#allocation5 + $0xc8] sm:$0xff]  ;;  %v119_v30 = vld [vmem:[#allocation5 + $0xc0] sm:$0xff]  ;;  %v118_v31 = vld [vmem:[#allocation5 + $0xb8] sm:$0xff] }
  0x16   :  { %v179_v32 = vld [vmem:[#allocation5 + $0x10] ss:$0 sm:$0xff]  ;;  %v116_v38 = vld [vmem:[#allocation5 + $0xa8] sm:$0xff]  ;;  %v115_v39 = vld [vmem:[#allocation5 + $0xa0] sm:$0xff] }
  0x17   :  { %97 = vmatpush.msra.mxu1 %v84_v8  ;;  %135 = vmatpush.msra.mxu2 %v128_v21  ;;  %v117_v37 = vld [vmem:[#allocation5 + $0xb0] sm:$0xff]  ;;  %v180_v40 = vld [vmem:[#allocation5 + $0x98] ss:$0 sm:$0xff]  ;;  %v181_v45 = vld [vmem:[#allocation5 + $0x120] ss:$0 sm:$0xff] }
  0x19   :  { %98 = vmatpush.msra.mxu1 %v83_v9  ;;  %136 = vmatpush.msra.mxu2 %v127_v22 }
  0x1b   :  { %99 = vmatpush.msra.mxu1 %v82_v10  ;;  %137 = vmatpush.msra.mxu2 %v126_v23 }
  0x1d   :  { %100 = vmatpush.msra.mxu1 %v81_v11  ;;  %138 = vmatpush.msra.mxu2 %v125_v24 }
  0x1f   :  { %101 = vmatpush.msra.mxu1 %v80_v12  ;;  %139 = vmatpush.msra.mxu2 %v124_v25 }
  0x21   :  { %102 = vmatpush.msra.mxu1 %v79_v13  ;;  %140 = vmatpush.msra.mxu2 %v123_v26 }
  0x23   :  { %103 = vmatpush.msra.mxu1 %v78_v14  ;;  %141 = vmatpush.msra.mxu2 %v122_v27 }
  0x25   :  { %104 = vmatpush.msra.mxu1 %v77_v15  ;;  %142 = vmatpush.msra.mxu2 %v121_v28 }
  0x27   :  { %105 = vmatpush.msra.mxu1 %v76_v16  ;;  %143 = vmatpush.msra.mxu2 %v120_v29 }
  0x29   :  { %106 = vmatpush.msra.mxu1 %v75_v17  ;;  %144 = vmatpush.msra.mxu2 %v119_v30 }
  0x2b   :  { %107 = vmatpush.msra.mxu1 %v74_v18  ;;  %145 = vmatpush.msra.mxu2 %v118_v31 }
  0x2d   :  { %146 = vmatpush.msra.mxu2 %v117_v37 }
  0x2f   :  { %147 = vmatpush.msra.mxu2 %v116_v38 }
  0x31   :  { %148 = vmatpush.msra.mxu2 %v115_v39 }
  0x8c   :  { %v68_v33 = vpop.f32.mrf.mxu0 }
  0x8d   :  { %v69_v34 = vadd.f32 %v179_v32, %v68_v33 }
  0x8f   :  { %vm71_vm1 = vcmp.ge.f32.partialorder %v69_v34, 0.0  ;;  %v72_v35 = vmul.f32 0.01, %v69_v34 }
  0x91   :  { %v73_v36 = vsel %vm71_vm1, %v69_v34, %v72_v35 }
  0x92   :  { %108 = vmatmul.f32.vlgmr.msra.gmra.mxu1 %v73_v36 }
 0x10f   :  { %v109_v41 = vpop.f32.mrf.mxu1 }
 0x110   :  { %v110_v42 = vadd.f32 %v180_v40, %v109_v41 }
 0x112   :  { %vm112_vm2 = vcmp.ge.f32.partialorder %v110_v42, 0.0  ;;  %v113_v43 = vmul.f32 0.01, %v110_v42 }
 0x114   :  { %v114_v44 = vsel %vm112_vm2, %v110_v42, %v113_v43 }
 0x115   :  { %149 = vmatmul.f32.vlgmr.msra.gmra.mxu2 %v114_v44 }
 0x198   :  { %v150_v46 = vpop.f32.mrf.mxu2 }
 0x199   :  { %v151_v47 = vadd.f32 %v181_v45, %v150_v46 }
 0x19b   :  { %182 = vtanh.f32 %v151_v47 }
 0x1a1   :  { %v183_v48 = vpop.eup %182 }
 0x1a2   :  { %154 = vst [vmem:[#allocation7] sm:$0xff] %v183_v48 }
 0x1a3   :  { %165 = dma.vmem_to_hbm [thread:$0]  %s161_s1, 128, %s163_s23, [#allocation4]  }
 0x1a4   :  { %260 = dma.done.wait [#allocation4], 128  }
 0x1a5   :  { %261 = vsyncadd [#allocation4], 4294967168 }
 0x1a6   :  { %170 = vsyncpa [#allocation3], 1 }
 0x1a7   :  { %171 = vsyncpa [#allocation6], 1 }
 0x1a8   :  { %172 = vsyncpa [#allocation4], 1 }

</bundles_post_ra>
